<compile_context>
chip_gen: v7x
topology: tpu7x:2x2x1
jax: 0.10.0
libtpu: 0.0.40
codegen_flags: <defaults>
</compile_context>

<pallas_src>
import jax
import jax.numpy as jnp
from jax.experimental import pallas as pl
from jax.experimental.pallas import tpu as pltpu


LANE_TILE = 256  # batch-tile granularity: multiple of 256 (v6e/v7x MXU) and 128 (v5e)


def _round_up(n, m):
    return ((n + m - 1) // m) * m


def _predictor_kernel(x_ref, wf_ref, w2_ref, w3_ref, wo_ref, o_ref):
    # x_ref: (4, TB) int32 column-offset indices (batch on the lane axis).
    # wf_ref: (H+1, K+1)  fused [table-gather + Linear0 | b1; 0...0 1]
    # w2_ref/w3_ref: (H+1, H+1) augmented hidden layers; wo_ref: (1, H+1).
    x = x_ref[...]
    tb = x.shape[1]
    k1 = wf_ref.shape[1]                       # 4*num_augs + 1 (last row = bias row)
    cdtype = wf_ref.dtype                      # MXU operand dtype (bf16 or f32)

    # Multi-hot (+ constant-1 bias row), built directly in (K+1, TB) layout.
    row = jax.lax.broadcasted_iota(jnp.int32, (k1, tb), 0)
    hit = ((row == x[0:1, :]) | (row == x[1:2, :])
           | (row == x[2:3, :]) | (row == x[3:4, :])
           | (row == (k1 - 1)))                # bias row is always 1
    mh = hit.astype(cdtype)                    # (K+1, TB)

    # Fused gather+Linear0, then the MLP.  All matmuls accumulate in f32;
    # ReLU / activations stay f32.  The constant-1 row survives ReLU (relu(1)=1).
    h = jnp.maximum(
        jnp.dot(wf_ref[...], mh, preferred_element_type=jnp.float32), 0.0)
    h = jnp.maximum(
        jnp.dot(w2_ref[...], h.astype(cdtype), preferred_element_type=jnp.float32), 0.0)
    h = jnp.maximum(
        jnp.dot(w3_ref[...], h.astype(cdtype), preferred_element_type=jnp.float32), 0.0)
    # Output layer (incl. bias via the constant-1 row) -> lane-dense (1, TB).
    o_ref[...] = jnp.dot(wo_ref[...], h.astype(cdtype),
                         preferred_element_type=jnp.float32)


def prepare_fused_params(params, *, use_bf16=True):
    """One-time parameter preparation (do NOT call per forward pass).

    Fuses the 4 shared-table embedding lookups with Linear0, transposes all
    weights to (out, in) for the batch-on-lanes layout, and folds every bias
    into an extra column (paired with a constant-1 row in the activations).
    """
    table = params["aug_table"]                    # (num_augs, embed_dim)
    num_augs, embed_dim = table.shape
    hidden = params["w1"].shape[1]
    K = 4 * num_augs
    H1 = hidden + 1

    # W_fused[c*num_augs + a, h] = sum_e table[a, e] * w1[c*embed_dim + e, h]
    w1r = params["w1"].reshape(4, embed_dim, hidden)
    wf = jnp.einsum("ae,ceh->cah", table, w1r).reshape(K, hidden)

    wf_aug = jnp.zeros((H1, K + 1), jnp.float32)
    wf_aug = wf_aug.at[:hidden, :K].set(wf.T)
    wf_aug = wf_aug.at[:hidden, K].set(params["b1"].reshape(hidden))
    wf_aug = wf_aug.at[hidden, K].set(1.0)         # keeps the constant-1 row alive

    def aug_square(w, b):
        m = jnp.zeros((H1, H1), jnp.float32)
        m = m.at[:hidden, :hidden].set(w.T)
        m = m.at[:hidden, hidden].set(b.reshape(hidden))
        m = m.at[hidden, hidden].set(1.0)
        return m

    wo_aug = jnp.zeros((1, H1), jnp.float32)
    wo_aug = wo_aug.at[0, :hidden].set(params["wo"].reshape(hidden))
    wo_aug = wo_aug.at[0, hidden].set(params["bo"].reshape(()))

    cdtype = jnp.bfloat16 if use_bf16 else jnp.float32
    return {
        "wf_aug": wf_aug.astype(cdtype),
        "w2_aug": aug_square(params["w2"], params["b2"]).astype(cdtype),
        "w3_aug": aug_square(params["w3"], params["b3"]).astype(cdtype),
        "wo_aug": wo_aug.astype(cdtype),
        "num_augs": int(num_augs),
    }


def _resident(shape):
    # Weight spec: full array, same block every grid step (stays VMEM-resident).
    return pl.BlockSpec(shape, lambda i: (0, 0))


def neural_predictor_embedding_forward(x, fused_params, *, block_b=2048):
    """x: (B, 4) int32 indices [aug1, mag1, aug2, mag2]; fused_params from
    prepare_fused_params().  Returns (B, 1) f32."""
    wf = fused_params["wf_aug"]
    w2 = fused_params["w2_aug"]
    w3 = fused_params["w3_aug"]
    wo = fused_params["wo_aug"]
    num_augs = fused_params["num_augs"]

    B = x.shape[0]
    # Offset each column into its own slice of the fused K axis, transpose so
    # the batch is the lane axis.
    offsets = (jnp.arange(4, dtype=jnp.int32) * num_augs)[None, :]
    x_t = (x.astype(jnp.int32) + offsets).T            # (4, B)

    # Batch tile: multiple of LANE_TILE, capped so the grid keeps >= 2 steps
    # when B is large (v7x has 2 TensorCores; harmless on v5e/v6e).
    block_b = max(LANE_TILE, _round_up(block_b, LANE_TILE))
    tb = min(block_b, max(LANE_TILE, _round_up(pl.cdiv(B, 2), LANE_TILE)))
    b_pad = _round_up(B, tb)
    if b_pad != B:
        x_t = jnp.pad(x_t, ((0, 0), (0, b_pad - B)))   # padded cols -> index 0 (valid)

    grid = (b_pad // tb,)

    out = pl.pallas_call(
        _predictor_kernel,
        out_shape=jax.ShapeDtypeStruct((1, b_pad), jnp.float32),
        grid=grid,
        in_specs=[
            pl.BlockSpec((4, tb), lambda i: (0, i)),   # x tile: streamed per grid step
            _resident(wf.shape),
            _resident(w2.shape),
            _resident(w3.shape),
            _resident(wo.shape),
        ],
        out_specs=pl.BlockSpec((1, tb), lambda i: (0, i)),   # lane-dense output row
        compiler_params=pltpu.CompilerParams(
            dimension_semantics=("parallel",)),
    )(x_t, wf, w2, w3, wo)
    return out.reshape(b_pad, 1)[:B]


def init_params(key, num_augs=25, num_mags=10, embed_dim=10, linear_hidden=10):
    ks = jax.random.split(key, 10)
    scale = 0.1
    params = {
        # Embedding tables (mag_table unused in forward, kept for parity w/ __init__).
        "aug_table": scale * jax.random.normal(ks[0], (num_augs, embed_dim), jnp.float32),
        "mag_table": scale * jax.random.normal(ks[1], (num_mags, embed_dim), jnp.float32),
        # Linear layers stored as (in, out) so the reference computes h @ W + b.
        "w1": scale * jax.random.normal(ks[2], (embed_dim * 4, linear_hidden), jnp.float32),
        "b1": scale * jax.random.normal(ks[3], (1, linear_hidden), jnp.float32),
        "w2": scale * jax.random.normal(ks[4], (linear_hidden, linear_hidden), jnp.float32),
        "b2": scale * jax.random.normal(ks[5], (1, linear_hidden), jnp.float32),
        "w3": scale * jax.random.normal(ks[6], (linear_hidden, linear_hidden), jnp.float32),
        "b3": scale * jax.random.normal(ks[7], (1, linear_hidden), jnp.float32),
        "wo": scale * jax.random.normal(ks[8], (linear_hidden, 1), jnp.float32),
        "bo": scale * jax.random.normal(ks[9], (1, 1), jnp.float32),
    }
    return params


def reference_forward(x, params):
    """Pure-JAX reference mirroring the PyTorch forward (aug table for all 4 columns)."""
    t = params["aug_table"]
    e = jnp.concatenate([t[x[:, 0]], t[x[:, 1]], t[x[:, 2]], t[x[:, 3]]], axis=1)
    h = jnp.maximum(e @ params["w1"] + params["b1"], 0.0)
    h = jnp.maximum(h @ params["w2"] + params["b2"], 0.0)
    h = jnp.maximum(h @ params["w3"] + params["b3"], 0.0)
    return h @ params["wo"] + params["bo"]


if __name__ == "__main__":
    num_augs, num_mags, embed_dim, linear_hidden = 25, 10, 10, 10
    B = 8

    key = jax.random.PRNGKey(0)
    k_aug1, k_mag1, k_aug2, k_mag2, k_params, k_big = jax.random.split(key, 6)
    # x columns: [aug1, mag1, aug2, mag2]
    x = jnp.stack([
        jax.random.randint(k_aug1, (B,), 0, num_augs),
        jax.random.randint(k_mag1, (B,), 0, num_mags),
        jax.random.randint(k_aug2, (B,), 0, num_augs),
        jax.random.randint(k_mag2, (B,), 0, num_mags),
    ], axis=1).astype(jnp.int32)

    params = init_params(k_params, num_augs, num_mags, embed_dim, linear_hidden)
    y_ref = reference_forward(x, params)

    # Prepare fused / augmented weights ONCE (not per forward call).
    prepared_f32 = prepare_fused_params(params, use_bf16=False)
    prepared_bf16 = prepare_fused_params(params, use_bf16=True)

    # Exact-f32 path (tight tolerance).
    y_f32 = neural_predictor_embedding_forward(x, prepared_f32)
    jax.block_until_ready(y_f32)
    assert y_f32.shape == (B, 1)
    assert jnp.allclose(y_f32, y_ref, atol=1e-5, rtol=1e-5), "f32 mismatch vs reference"

    # bf16 MXU-operand path (default; looser tolerance due to bf16 operands).
    y_bf16 = neural_predictor_embedding_forward(x, prepared_bf16)
    jax.block_until_ready(y_bf16)
    assert y_bf16.shape == (B, 1)
    assert jnp.allclose(y_bf16, y_ref, atol=3e-2, rtol=1e-1), "bf16 mismatch vs reference"

    # Larger batch to exercise the batch grid + padding path (tb=256, grid=(2,)).
    B2 = 300
    x2 = jnp.stack([
        jax.random.randint(jax.random.fold_in(k_big, 0), (B2,), 0, num_augs),
        jax.random.randint(jax.random.fold_in(k_big, 1), (B2,), 0, num_mags),
        jax.random.randint(jax.random.fold_in(k_big, 2), (B2,), 0, num_augs),
        jax.random.randint(jax.random.fold_in(k_big, 3), (B2,), 0, num_mags),
    ], axis=1).astype(jnp.int32)
    y2 = neural_predictor_embedding_forward(x2, prepared_f32)
    jax.block_until_ready(y2)
    y2_ref = reference_forward(x2, params)
    assert y2.shape == (B2, 1)
    assert jnp.allclose(y2, y2_ref, atol=1e-5, rtol=1e-5), "gridded mismatch vs reference"

    print("KERNEL_OK")
</pallas_src>

<mosaic_0001>
module attributes {stable_mosaic.version = 11 : i64} {
  func.func @_predictor_kernel(%arg0: i32, %arg1: memref<4x256xi32, #tpu.memory_space<vmem>>, %arg2: memref<11x101xf32, #tpu.memory_space<vmem>>, %arg3: memref<11x11xf32, #tpu.memory_space<vmem>>, %arg4: memref<11x11xf32, #tpu.memory_space<vmem>>, %arg5: memref<1x11xf32, #tpu.memory_space<vmem>>, %arg6: memref<1x256xf32, #tpu.memory_space<vmem>>) attributes {dimension_semantics = [#tpu.dimension_semantics<parallel>], iteration_bounds = array<i64: 1>, scalar_prefetch = 0 : i64, scratch_operands = 0 : i64, tpu.core_type = #tpu.core_type<tc>, window_params = [{transform_indices = @transform_0, window_bounds = array<i64: 4, 256>}, {pipeline_mode = #tpu.pipeline_mode<synchronous>, transform_indices = @transform_1, window_bounds = array<i64: 11, 101>}, {pipeline_mode = #tpu.pipeline_mode<synchronous>, transform_indices = @transform_2, window_bounds = array<i64: 11, 11>}, {pipeline_mode = #tpu.pipeline_mode<synchronous>, transform_indices = @transform_3, window_bounds = array<i64: 11, 11>}, {pipeline_mode = #tpu.pipeline_mode<synchronous>, transform_indices = @transform_4, window_bounds = array<i64: 1, 11>}, {transform_indices = @transform_5, window_bounds = array<i64: 1, 256>}]} {
    %c0 = arith.constant 0 : index
    %c0_0 = arith.constant 0 : index
    %0 = vector.load %arg1[%c0, %c0_0] : memref<4x256xi32, #tpu.memory_space<vmem>>, vector<4x256xi32>
    %1 = tpu.iota {dimensions = array<i32: 0>} : vector<101x256xi32>
    %2 = vector.extract_strided_slice %0 {offsets = [0, 0], sizes = [1, 256], strides = [1, 1]} : vector<4x256xi32> to vector<1x256xi32>
    %3 = vector.broadcast %2 : vector<1x256xi32> to vector<101x256xi32>
    %4 = arith.cmpi eq, %1, %3 : vector<101x256xi32>
    %5 = vector.extract_strided_slice %0 {offsets = [1, 0], sizes = [1, 256], strides = [1, 1]} : vector<4x256xi32> to vector<1x256xi32>
    %6 = vector.broadcast %5 : vector<1x256xi32> to vector<101x256xi32>
    %7 = arith.cmpi eq, %1, %6 : vector<101x256xi32>
    %8 = arith.ori %4, %7 : vector<101x256xi1>
    %9 = vector.extract_strided_slice %0 {offsets = [2, 0], sizes = [1, 256], strides = [1, 1]} : vector<4x256xi32> to vector<1x256xi32>
    %10 = vector.broadcast %9 : vector<1x256xi32> to vector<101x256xi32>
    %11 = arith.cmpi eq, %1, %10 : vector<101x256xi32>
    %12 = arith.ori %8, %11 : vector<101x256xi1>
    %13 = vector.extract_strided_slice %0 {offsets = [3, 0], sizes = [1, 256], strides = [1, 1]} : vector<4x256xi32> to vector<1x256xi32>
    %14 = vector.broadcast %13 : vector<1x256xi32> to vector<101x256xi32>
    %15 = arith.cmpi eq, %1, %14 : vector<101x256xi32>
    %16 = arith.ori %12, %15 : vector<101x256xi1>
    %c100_i32 = arith.constant 100 : i32
    %17 = vector.broadcast %c100_i32 : i32 to vector<101x256xi32>
    %18 = arith.cmpi eq, %1, %17 : vector<101x256xi32>
    %19 = arith.ori %16, %18 : vector<101x256xi1>
    %20 = arith.extui %19 : vector<101x256xi1> to vector<101x256xi32>
    %21 = arith.sitofp %20 : vector<101x256xi32> to vector<101x256xf32>
    %c0_1 = arith.constant 0 : index
    %c0_2 = arith.constant 0 : index
    %22 = vector.load %arg2[%c0_1, %c0_2] : memref<11x101xf32, #tpu.memory_space<vmem>>, vector<11x101xf32>
    %cst = arith.constant dense<0.000000e+00> : vector<11x256xf32>
    %23 = tpu.matmul %22, %21, %cst {dimension_numbers = #tpu.dot_dimension_numbers<[1], [0], [0], [1], [0, 0, 1, 1], [], []>} : vector<11x101xf32>, vector<101x256xf32>, vector<11x256xf32> -> vector<11x256xf32>
    %cst_3 = arith.constant 0.000000e+00 : f32
    %24 = vector.broadcast %cst_3 : f32 to vector<11x256xf32>
    %25 = arith.maximumf %23, %24 : vector<11x256xf32>
    %c0_4 = arith.constant 0 : index
    %c0_5 = arith.constant 0 : index
    %26 = vector.load %arg3[%c0_4, %c0_5] : memref<11x11xf32, #tpu.memory_space<vmem>>, vector<11x11xf32>
    %cst_6 = arith.constant dense<0.000000e+00> : vector<11x256xf32>
    %27 = tpu.matmul %26, %25, %cst_6 {dimension_numbers = #tpu.dot_dimension_numbers<[1], [0], [0], [1], [0, 0, 1, 1], [], []>} : vector<11x11xf32>, vector<11x256xf32>, vector<11x256xf32> -> vector<11x256xf32>
    %cst_7 = arith.constant 0.000000e+00 : f32
    %28 = vector.broadcast %cst_7 : f32 to vector<11x256xf32>
    %29 = arith.maximumf %27, %28 : vector<11x256xf32>
    %c0_8 = arith.constant 0 : index
    %c0_9 = arith.constant 0 : index
    %30 = vector.load %arg4[%c0_8, %c0_9] : memref<11x11xf32, #tpu.memory_space<vmem>>, vector<11x11xf32>
    %cst_10 = arith.constant dense<0.000000e+00> : vector<11x256xf32>
    %31 = tpu.matmul %30, %29, %cst_10 {dimension_numbers = #tpu.dot_dimension_numbers<[1], [0], [0], [1], [0, 0, 1, 1], [], []>} : vector<11x11xf32>, vector<11x256xf32>, vector<11x256xf32> -> vector<11x256xf32>
    %cst_11 = arith.constant 0.000000e+00 : f32
    %32 = vector.broadcast %cst_11 : f32 to vector<11x256xf32>
    %33 = arith.maximumf %31, %32 : vector<11x256xf32>
    %c0_12 = arith.constant 0 : index
    %c0_13 = arith.constant 0 : index
    %34 = vector.load %arg5[%c0_12, %c0_13] : memref<1x11xf32, #tpu.memory_space<vmem>>, vector<1x11xf32>
    %cst_14 = arith.constant dense<0.000000e+00> : vector<1x256xf32>
    %35 = tpu.matmul %34, %33, %cst_14 {dimension_numbers = #tpu.dot_dimension_numbers<[1], [0], [0], [1], [0, 0, 1, 1], [], []>} : vector<1x11xf32>, vector<11x256xf32>, vector<1x256xf32> -> vector<1x256xf32>
    %c0_15 = arith.constant 0 : index
    %c0_16 = arith.constant 0 : index
    %36 = vector.load %arg6[%c0_15, %c0_16] : memref<1x256xf32, #tpu.memory_space<vmem>>, vector<1x256xf32>
    tpu.vector_store %arg6[%c0_15, %c0_16], %35 {strides = array<i32>} : memref<1x256xf32, #tpu.memory_space<vmem>>, vector<1x256xf32>,
    return
  }
  func.func @transform_0(%arg0: i32) -> (i32, i32) {
    %c0_i32 = arith.constant 0 : i32
    %c0_i32_0 = arith.constant 0 : i32
    return %c0_i32, %arg0 : i32, i32
  }
  func.func @transform_1(%arg0: i32) -> (i32, i32) {
    %c0_i32 = arith.constant 0 : i32
    %c0_i32_0 = arith.constant 0 : i32
    %c0_i32_1 = arith.constant 0 : i32
    return %c0_i32, %c0_i32_0 : i32, i32
  }
  func.func @transform_2(%arg0: i32) -> (i32, i32) {
    %c0_i32 = arith.constant 0 : i32
    %c0_i32_0 = arith.constant 0 : i32
    %c0_i32_1 = arith.constant 0 : i32
    return %c0_i32, %c0_i32_0 : i32, i32
  }
  func.func @transform_3(%arg0: i32) -> (i32, i32) {
    %c0_i32 = arith.constant 0 : i32
    %c0_i32_0 = arith.constant 0 : i32
    %c0_i32_1 = arith.constant 0 : i32
    return %c0_i32, %c0_i32_0 : i32, i32
  }
  func.func @transform_4(%arg0: i32) -> (i32, i32) {
    %c0_i32 = arith.constant 0 : i32
    %c0_i32_0 = arith.constant 0 : i32
    %c0_i32_1 = arith.constant 0 : i32
    return %c0_i32, %c0_i32_0 : i32, i32
  }
  func.func @transform_5(%arg0: i32) -> (i32, i32) {
    %c0_i32 = arith.constant 0 : i32
    %c0_i32_0 = arith.constant 0 : i32
    return %c0_i32, %arg0 : i32, i32
  }
}

</mosaic_0001>

<bundles_post_ra>
// kernel: tpu_custom_call.1
= control target key start
LH: loop header
LB: loop body
LE: loop exit
PB: predicated region body
PF: predicated region fallthrough
CT: control target
= control target key end

     0   :  { %10 = vsyncpa [#allocation3], 0  ;;  %s1380_s0 = inlined_call_operand.hbm [shape: s32[4,256], index: 0, kind: input, shape index: {}]   ;;  %s1381_s1 = inlined_call_operand.hbm [shape: f32[11,101], index: 1, kind: input, shape index: {}]   ;;  %s1382_s2 = inlined_call_operand.hbm [shape: f32[11,11], index: 2, kind: input, shape index: {}]   ;;  %s1383_s3 = inlined_call_operand.hbm [shape: f32[11,11], index: 3, kind: input, shape index: {}]   ;;  %s1384_s4 = inlined_call_operand.vmem [shape: f32[1,11], index: 4, kind: input, shape index: {}]   ;;  %s1385_s5 = inlined_call_operand.hbm [shape: f32[1,256], index: 5, kind: output, shape index: {}]  }
   0x1   :  { %11 = vsyncpa [#allocation6], 0 }
   0x2   :  { %12 = vsyncpa [#allocation9], 0 }
   0x3   :  { %13 = vsyncpa [#allocation4], 0  ;;  %s1072_s18 = smov [#allocation5]   ;;  %s954_s22 = scalar_lea.hbm %s1381_s1, 256 }
   0x4   :  { %s29_s19 = sshll.u32 %s1072_s18, 4  ;;  %p955_p0 = scmp.ne.s32.totalorder %s1381_s1, %s954_s22  ;;  %s30_s19 = int_to_ptr.vmem [resolvable:$true] %s29_s19 }
   0x5   :  { %p958_p1 = scmp.lt.u32.totalorder %s954_s22, %s1381_s1 }
   0x7   :  { %p960_p2 = pnand %p958_p1, %p955_p0 }
   0x9   :  { %963 = shalt.err (!%p960_p2)
}
   0xa   :  { %s964_s27 = scalar_lea.vmem %s30_s19, 256  ;;  %p969_p4 = scmp.lt.s32.totalorder %s30_s19, %s30_s19 }
   0xb   :  { %p965_p3 = scmp.ne.s32.totalorder %s30_s19, %s964_s27  ;;  %p970_p5 = scmp.lt.s32.totalorder %s964_s27, %s964_s27 }
   0xd   :  { %p971_p6 = por %p970_p5, %p969_p4 }
   0xf   :  { %p972_p7 = pnand %p971_p6, %p965_p3 }
  0x11   :  { %975 = shalt.err (!%p972_p7)
}
  0x12   :  { %s1073_s28 = smov 128   ;;  %s1074_s29 = smov 8  }
  0x13   :  { %35 = dma.hbm_to_vmem [thread:$0]  %s1381_s1, 256, %s30_s19, [#allocation6], %s1073_s28, %s1073_s28, %s1074_s29  }
  0x14   :  { %s1075_s7 = smov [#allocation2]   ;;  %s1076_s9 = smov [#allocation7]  }
  0x15   :  { %s20_s8 = sshll.u32 %s1075_s7, 4  ;;  %s41_s10 = sshll.u32 %s1076_s9, 4  ;;  %s21_s8 = int_to_ptr.vmem [resolvable:$true] %s20_s8  ;;  %s42_s10 = int_to_ptr.vmem [resolvable:$true] %s41_s10 }
  0x16   :  { %s976_s13 = scalar_lea.hbm %s1380_s0, 128 }
  0x17   :  { %p977_p8 = scmp.ne.s32.totalorder %s1380_s0, %s976_s13  ;;  %p980_p9 = scmp.lt.u32.totalorder %s976_s13, %s1380_s0 }
  0x19   :  { %p982_p10 = pnand %p980_p9, %p977_p8 }
  0x1b   :  { %985 = shalt.err (!%p982_p10)
}
  0x1c   :  { %s986_s1 = scalar_lea.vmem %s21_s8, 128  ;;  %p991_p12 = scmp.lt.s32.totalorder %s21_s8, %s21_s8 }
  0x1d   :  { %p987_p11 = scmp.ne.s32.totalorder %s21_s8, %s986_s1  ;;  %p992_p13 = scmp.lt.s32.totalorder %s986_s1, %s986_s1 }
  0x1f   :  { %p993_p0 = por %p992_p13, %p991_p12 }
  0x21   :  { %p994_p1 = pnand %p993_p0, %p987_p11 }
  0x23   :  { %997 = shalt.err (!%p994_p1)
}
  0x24   :  { %23 = dma.hbm_to_vmem [thread:$0]  %s1380_s0, 128, %s21_s8, [#allocation3]  }
  0x25   :  { %s998_s22 = scalar_lea.hbm %s1382_s2, 256 }
  0x26   :  { %p999_p2 = scmp.ne.s32.totalorder %s1382_s2, %s998_s22  ;;  %p1002_p3 = scmp.lt.u32.totalorder %s998_s22, %s1382_s2 }
  0x28   :  { %p1004_p4 = pnand %p1002_p3, %p999_p2 }
  0x2a   :  { %1007 = shalt.err (!%p1004_p4)
}
  0x2b   :  { %s1008_s27 = scalar_lea.vmem %s42_s10, 256  ;;  %p1013_p6 = scmp.lt.s32.totalorder %s42_s10, %s42_s10 }
  0x2c   :  { %p1009_p5 = scmp.ne.s32.totalorder %s42_s10, %s1008_s27  ;;  %p1014_p7 = scmp.lt.s32.totalorder %s1008_s27, %s1008_s27 }
  0x2e   :  { %p1015_p8 = por %p1014_p7, %p1013_p6 }
  0x30   :  { %p1016_p9 = pnand %p1015_p8, %p1009_p5 }
  0x32   :  { %1019 = shalt.err (!%p1016_p9)
}
  0x33   :  { %47 = dma.hbm_to_vmem [thread:$0]  %s1382_s2, 256, %s42_s10, [#allocation6], %s1073_s28, %s1073_s28, %s1074_s29  }
  0x34   :  { %s1077_s6 = smov [#allocation8]   ;;  %s1020_s11 = scalar_lea.hbm %s1383_s3, 256 }
  0x35   :  { %s53_s7 = sshll.u32 %s1077_s6, 4  ;;  %p1021_p10 = scmp.ne.s32.totalorder %s1383_s3, %s1020_s11  ;;  %s54_s7 = int_to_ptr.vmem [resolvable:$true] %s53_s7 }
  0x36   :  { %p1024_p11 = scmp.lt.u32.totalorder %s1020_s11, %s1383_s3 }
  0x38   :  { %p1026_p12 = pnand %p1024_p11, %p1021_p10 }
  0x3a   :  { %1029 = shalt.err (!%p1026_p12)
}
  0x3b   :  { %s1030_s16 = scalar_lea.vmem %s54_s7, 256  ;;  %p1035_p0 = scmp.lt.s32.totalorder %s54_s7, %s54_s7 }
  0x3c   :  { %p1031_p13 = scmp.ne.s32.totalorder %s54_s7, %s1030_s16  ;;  %p1036_p1 = scmp.lt.s32.totalorder %s1030_s16, %s1030_s16 }
  0x3e   :  { %p1037_p2 = por %p1036_p1, %p1035_p0 }
  0x40   :  { %p1038_p3 = pnand %p1037_p2, %p1031_p13 }
  0x42   :  { %1041 = shalt.err (!%p1038_p3)
}
  0x43   :  { %59 = dma.hbm_to_vmem [thread:$0]  %s1383_s3, 256, %s54_s7, [#allocation9], %s1073_s28, %s1073_s28, %s1074_s29  }
  0x44   :  { %1064 = dma.done.wait [#allocation3], 128  }
  0x45   :  { %1065 = vsyncadd [#allocation3], 4294967168 }
  0x46   :  { %1066 = dma.done.wait [#allocation6], 512  }
  0x47   :  { %1067 = vsyncadd [#allocation6], 4294966784 }
  0x48   :  { %1068 = dma.done.wait [#allocation9], 256  }
  0x49   :  { %1069 = vsyncadd [#allocation9], 4294967040  ;;  %v75_v0 = vlaneseq  ;;  %v1078_v1 = vmov 0.0   ;;  %v74_v11 = vld [vmem:[#allocation2] sm:$0xff]  ;;  %v1079_v29 = vmov 1.0|1.0  }
  0x4a   :  { %506 = vmatprep.mubr.f32.mxu0 %v1078_v1  ;;  %603 = vmatprep.mubr.f32.mxu1 %v1078_v1  ;;  %v426_v42 = vld [vmem:[#allocation5] sm:$0xff]  ;;  %v427_v44 = vld [vmem:[#allocation5 + $0x8] sm:$0x7]  ;;  %v523_v56 = vld [vmem:[#allocation7] sm:$0xff]  ;;  %s1082_s29 = smov [#allocation10]  }
  0x4b   :  { %v1173_v2 = vshrl.u32 %v75_v0, 7  ;;  %v524_v57 = vld [vmem:[#allocation7 + $0x8] sm:$0x7]  ;;  %s825_s17 = sshll.u32 %s1082_s29, 4  ;;  %s826_s17 = int_to_ptr.vmem [resolvable:$true] %s825_s17 }
  0x4c   :  { %s1042_s1 = scalar_lea.vmem %s826_s17, 32  ;;  %p1047_p5 = scmp.lt.s32.totalorder %s826_s17, %s826_s17 }
  0x4d   :  { %v95_v3 = vsub.s32 4, %v1173_v2  ;;  %v91_v4 = vsub.s32 0, %v1173_v2  ;;  %v133_v5 = vsub.s32 1, %v1173_v2  ;;  %v137_v6 = vsub.s32 5, %v1173_v2  ;;  %p1043_p4 = scmp.ne.s32.totalorder %s826_s17, %s1042_s1  ;;  %p1048_p6 = scmp.lt.s32.totalorder %s1042_s1, %s1042_s1 }
  0x4e   :  { %v205_v7 = vsub.s32 6, %v1173_v2  ;;  %v201_v8 = vsub.s32 2, %v1173_v2  ;;  %v269_v9 = vsub.s32 3, %v1173_v2  ;;  %v273_v10 = vsub.s32 7, %v1173_v2 }
  0x4f   :  { %v77_v12 = vadd.s32 8, %v1173_v2  ;;  %v96_v13 = vrot.slane %v74_v11, %v95_v3  ;;  %v138_v14 = vrot.slane %v74_v11, %v137_v6  ;;  %v92_v17 = vrot.slane %v74_v11, %v91_v4  ;;  %p1049_p7 = por %p1048_p6, %p1047_p5 }
  0x50   :  { %v206_v15 = vrot.slane %v74_v11, %v205_v7  ;;  %v274_v16 = vrot.slane %v74_v11, %v273_v10  ;;  %v134_v18 = vrot.slane %v74_v11, %v133_v5  ;;  %v202_v23 = vrot.slane %v74_v11, %v201_v8  ;;  %v620_v7 = vld [vmem:[#allocation8] sm:$0xff] }
  0x51   :  { %v1184_v19 = vrot.slane %v96_v13, %v91_v4  ;;  %v1186_v20 = vrot.slane %v138_v14, %v133_v5  ;;  %v270_v24 = vrot.slane %v74_v11, %v269_v9  ;;  %v1201_v25 = vrot.slane %v92_v17, %v91_v4  ;;  %p1050_p8 = pnand %p1049_p7, %p1043_p4 }
  0x52   :  { %v1188_v21 = vrot.slane %v206_v15, %v201_v8  ;;  %v1190_v22 = vrot.slane %v274_v16, %v269_v9  ;;  %v1203_v26 = vrot.slane %v134_v18, %v133_v5  ;;  %v1208_v27 = vrot.slane %v202_v23, %v201_v8  ;;  %v621_v8 = vld [vmem:[#allocation8 + $0x8] sm:$0x7] }
  0x53   :  { %vm106_vm0 = vcmp.eq.s32.totalorder %v1173_v2, %v1184_v19  ;;  %vm108_vm1 = vcmp.eq.s32.totalorder %v77_v12, %v1184_v19  ;;  %vm148_vm2 = vcmp.eq.s32.totalorder %v1173_v2, %v1186_v20  ;;  %vm150_vm3 = vcmp.eq.s32.totalorder %v77_v12, %v1186_v20 }
  0x54   :  { %vm174_vm4 = vmor %vm106_vm0, %vm148_vm2  ;;  %vm216_vm5 = vcmp.eq.s32.totalorder %v1173_v2, %v1188_v21  ;;  %vm218_vm6 = vcmp.eq.s32.totalorder %v77_v12, %v1188_v21  ;;  %vm284_vm8 = vcmp.eq.s32.totalorder %v1173_v2, %v1190_v22  ;;  %vm286_vm10 = vcmp.eq.s32.totalorder %v77_v12, %v1190_v22 }
  0x55   :  { %vm176_vm7 = vmor %vm108_vm1, %vm150_vm3  ;;  %vm105_vm13 = vcmp.eq.s32.totalorder %v1173_v2, %v1201_v25  ;;  %vm147_vm14 = vcmp.eq.s32.totalorder %v1173_v2, %v1203_v26  ;;  %v1214_v28 = vrot.slane %v270_v24, %v269_v9  ;;  %vm107_vm0 = vcmp.eq.s32.totalorder %v77_v12, %v1201_v25 }
  0x56   :  { %vm242_vm9 = vmor %vm174_vm4, %vm216_vm5  ;;  %vm149_vm1 = vcmp.eq.s32.totalorder %v77_v12, %v1203_v26  ;;  %vm215_vm3 = vcmp.eq.s32.totalorder %v1173_v2, %v1208_v27  ;;  %vm217_vm5 = vcmp.eq.s32.totalorder %v77_v12, %v1208_v27  ;;  %v78_v30 = vadd.s32 16, %v1173_v2 }
  0x57   :  { %vm244_vm11 = vmor %vm176_vm7, %vm218_vm6  ;;  %vm283_vm7 = vcmp.eq.s32.totalorder %v1173_v2, %v1214_v28  ;;  %v79_v31 = vadd.s32 24, %v1173_v2  ;;  %v80_v32 = vadd.s32 32, %v1173_v2  ;;  %v81_v33 = vadd.s32 40, %v1173_v2 }
  0x58   :  { %vm310_vm12 = vmor %vm242_vm9, %vm284_vm8  ;;  %vm285_vm9 = vcmp.eq.s32.totalorder %v77_v12, %v1214_v28  ;;  %v82_v34 = vadd.s32 48, %v1173_v2  ;;  %v83_v35 = vadd.s32 56, %v1173_v2  ;;  %v84_v36 = vadd.s32 64, %v1173_v2 }
  0x59   :  { %vm312_vm15 = vmor %vm244_vm11, %vm286_vm10  ;;  %v85_v37 = vadd.s32 72, %v1173_v2  ;;  %v86_v38 = vadd.s32 80, %v1173_v2  ;;  %v87_v39 = vadd.s32 88, %v1173_v2  ;;  %v88_v40 = vadd.s32 96, %v1173_v2 }
  0x5a   :  { %vm901_vm2 = vmpackc.low %vm312_vm15, %vm310_vm12  ;;  %vm110_vm12 = vcmp.eq.s32.totalorder %v78_v30, %v1184_v19  ;;  %vm152_vm15 = vcmp.eq.s32.totalorder %v78_v30, %v1186_v20 }
  0x5b   :  { %902 = vmatprep.subr.msk.bf16.mxu0 %vm901_vm2, %v1079_v29  ;;  %vm173_vm4 = vmor %vm105_vm13, %vm147_vm14  ;;  %vm112_vm14 = vcmp.eq.s32.totalorder %v79_v31, %v1184_v19  ;;  %vm154_vm2 = vcmp.eq.s32.totalorder %v79_v31, %v1186_v20 }
  0x5c   :  { %vm175_vm6 = vmor %vm107_vm0, %vm149_vm1  ;;  %vm220_vm1 = vcmp.eq.s32.totalorder %v78_v30, %v1188_v21 }
  0x5d   :  { %vm241_vm8 = vmor %vm173_vm4, %vm215_vm3  ;;  %vm222_vm4 = vcmp.eq.s32.totalorder %v79_v31, %v1188_v21 }
  0x5e   :  { %vm243_vm10 = vmor %vm175_vm6, %vm217_vm5  ;;  %vm288_vm6 = vcmp.eq.s32.totalorder %v78_v30, %v1190_v22 }
  0x5f   :  { %vm309_vm11 = vmor %vm241_vm8, %vm283_vm7  ;;  %vm290_vm8 = vcmp.eq.s32.totalorder %v79_v31, %v1190_v22 }
  0x60   :  { %vm311_vm13 = vmor %vm243_vm10, %vm285_vm9 }
  0x61   :  { %vm903_vm0 = vmpackc.low %vm311_vm13, %vm309_vm11  ;;  %vm109_vm11 = vcmp.eq.s32.totalorder %v78_v30, %v1201_v25  ;;  %vm151_vm13 = vcmp.eq.s32.totalorder %v78_v30, %v1203_v26 }
  0x62   :  { %904 = vmatpush1.bf16.msk.msra.mxu0 %vm903_vm0, %v1079_v29  ;;  %vm178_vm3 = vmor %vm110_vm12, %vm152_vm15  ;;  %vm111_vm12 = vcmp.eq.s32.totalorder %v79_v31, %v1201_v25  ;;  %vm153_vm15 = vcmp.eq.s32.totalorder %v79_v31, %v1203_v26 }
  0x63   :  { %vm180_vm5 = vmor %vm112_vm14, %vm154_vm2  ;;  %vm219_vm14 = vcmp.eq.s32.totalorder %v78_v30, %v1208_v27 }
  0x64   :  { %vm246_vm7 = vmor %vm178_vm3, %vm220_vm1  ;;  %vm221_vm3 = vcmp.eq.s32.totalorder %v79_v31, %v1208_v27 }
  0x65   :  { %vm248_vm9 = vmor %vm180_vm5, %vm222_vm4  ;;  %vm287_vm5 = vcmp.eq.s32.totalorder %v78_v30, %v1214_v28 }
  0x66   :  { %vm314_vm10 = vmor %vm246_vm7, %vm288_vm6  ;;  %vm289_vm7 = vcmp.eq.s32.totalorder %v79_v31, %v1214_v28 }
  0x67   :  { %vm316_vm0 = vmor %vm248_vm9, %vm290_vm8 }
  0x68   :  { %vm905_vm2 = vmpackc.low %vm316_vm0, %vm314_vm10  ;;  %vm114_vm10 = vcmp.eq.s32.totalorder %v80_v32, %v1184_v19  ;;  %vm156_vm0 = vcmp.eq.s32.totalorder %v80_v32, %v1186_v20 }
  0x69   :  { %906 = vmatprep.subr.msk.bf16.mxu0 %vm905_vm2, %v1079_v29  ;;  %vm177_vm1 = vmor %vm109_vm11, %vm151_vm13  ;;  %vm116_vm11 = vcmp.eq.s32.totalorder %v81_v33, %v1184_v19  ;;  %vm158_vm13 = vcmp.eq.s32.totalorder %v81_v33, %v1186_v20 }
  0x6a   :  { %vm179_vm4 = vmor %vm111_vm12, %vm153_vm15  ;;  %vm224_vm15 = vcmp.eq.s32.totalorder %v80_v32, %v1188_v21 }
  0x6b   :  { %vm245_vm6 = vmor %vm177_vm1, %vm219_vm14  ;;  %vm226_vm14 = vcmp.eq.s32.totalorder %v81_v33, %v1188_v21 }
  0x6c   :  { %vm247_vm8 = vmor %vm179_vm4, %vm221_vm3  ;;  %vm292_vm4 = vcmp.eq.s32.totalorder %v80_v32, %v1190_v22 }
  0x6d   :  { %vm313_vm9 = vmor %vm245_vm6, %vm287_vm5  ;;  %vm294_vm6 = vcmp.eq.s32.totalorder %v81_v33, %v1190_v22 }
  0x6e   :  { %vm315_vm2 = vmor %vm247_vm8, %vm289_vm7 }
  0x6f   :  { %vm907_vm12 = vmpackc.low %vm315_vm2, %vm313_vm9  ;;  %vm113_vm2 = vcmp.eq.s32.totalorder %v80_v32, %v1201_v25  ;;  %vm155_vm9 = vcmp.eq.s32.totalorder %v80_v32, %v1203_v26 }
  0x70   :  { %908 = vmatpush1.bf16.msk.msra.mxu0 %vm907_vm12, %v1079_v29  ;;  %vm182_vm1 = vmor %vm114_vm10, %vm156_vm0  ;;  %vm115_vm0 = vcmp.eq.s32.totalorder %v81_v33, %v1201_v25  ;;  %vm157_vm10 = vcmp.eq.s32.totalorder %v81_v33, %v1203_v26 }
  0x71   :  { %vm184_vm3 = vmor %vm116_vm11, %vm158_vm13  ;;  %vm223_vm13 = vcmp.eq.s32.totalorder %v80_v32, %v1208_v27 }
  0x72   :  { %vm250_vm5 = vmor %vm182_vm1, %vm224_vm15  ;;  %vm225_vm15 = vcmp.eq.s32.totalorder %v81_v33, %v1208_v27 }
  0x73   :  { %vm252_vm7 = vmor %vm184_vm3, %vm226_vm14  ;;  %vm291_vm3 = vcmp.eq.s32.totalorder %v80_v32, %v1214_v28 }
  0x74   :  { %vm318_vm8 = vmor %vm250_vm5, %vm292_vm4  ;;  %vm293_vm5 = vcmp.eq.s32.totalorder %v81_v33, %v1214_v28 }
  0x75   :  { %vm320_vm12 = vmor %vm252_vm7, %vm294_vm6 }
  0x76   :  { %vm909_vm11 = vmpackc.low %vm320_vm12, %vm318_vm8  ;;  %vm118_vm8 = vcmp.eq.s32.totalorder %v82_v34, %v1184_v19  ;;  %vm160_vm12 = vcmp.eq.s32.totalorder %v82_v34, %v1186_v20 }
  0x77   :  { %910 = vmatprep.subr.msk.bf16.mxu0 %vm909_vm11, %v1079_v29  ;;  %vm181_vm1 = vmor %vm113_vm2, %vm155_vm9  ;;  %vm120_vm2 = vcmp.eq.s32.totalorder %v83_v35, %v1184_v19  ;;  %vm162_vm9 = vcmp.eq.s32.totalorder %v83_v35, %v1186_v20 }
  0x78   :  { %vm183_vm14 = vmor %vm115_vm0, %vm157_vm10  ;;  %vm228_vm10 = vcmp.eq.s32.totalorder %v82_v34, %v1188_v21 }
  0x79   :  { %vm249_vm4 = vmor %vm181_vm1, %vm223_vm13  ;;  %vm230_vm13 = vcmp.eq.s32.totalorder %v83_v35, %v1188_v21 }
  0x7a   :  { %vm251_vm6 = vmor %vm183_vm14, %vm225_vm15  ;;  %vm296_vm15 = vcmp.eq.s32.totalorder %v82_v34, %v1190_v22 }
  0x7b   :  { %vm317_vm7 = vmor %vm249_vm4, %vm291_vm3  ;;  %vm298_vm4 = vcmp.eq.s32.totalorder %v83_v35, %v1190_v22 }
  0x7c   :  { %vm319_vm11 = vmor %vm251_vm6, %vm293_vm5 }
  0x7d   :  { %vm911_vm0 = vmpackc.low %vm319_vm11, %vm317_vm7  ;;  %vm117_vm7 = vcmp.eq.s32.totalorder %v82_v34, %v1201_v25  ;;  %vm159_vm11 = vcmp.eq.s32.totalorder %v82_v34, %v1203_v26 }
  0x7e   :  { %912 = vmatpush1.bf16.msk.msra.mxu0 %vm911_vm0, %v1079_v29  ;;  %vm186_vm1 = vmor %vm118_vm8, %vm160_vm12  ;;  %vm119_vm8 = vcmp.eq.s32.totalorder %v83_v35, %v1201_v25  ;;  %vm161_vm12 = vcmp.eq.s32.totalorder %v83_v35, %v1203_v26 }
  0x7f   :  { %vm188_vm14 = vmor %vm120_vm2, %vm162_vm9  ;;  %vm227_vm9 = vcmp.eq.s32.totalorder %v82_v34, %v1208_v27 }
  0x80   :  { %vm254_vm3 = vmor %vm186_vm1, %vm228_vm10  ;;  %vm229_vm10 = vcmp.eq.s32.totalorder %v83_v35, %v1208_v27 }
  0x81   :  { %vm256_vm5 = vmor %vm188_vm14, %vm230_vm13  ;;  %vm295_vm14 = vcmp.eq.s32.totalorder %v82_v34, %v1214_v28 }
  0x82   :  { %vm322_vm6 = vmor %vm254_vm3, %vm296_vm15  ;;  %vm297_vm3 = vcmp.eq.s32.totalorder %v83_v35, %v1214_v28 }
  0x83   :  { %vm324_vm0 = vmor %vm256_vm5, %vm298_vm4 }
  0x84   :  { %vm913_vm2 = vmpackc.low %vm324_vm0, %vm322_vm6  ;;  %vm122_vm6 = vcmp.eq.s32.totalorder %v84_v36, %v1184_v19  ;;  %vm164_vm0 = vcmp.eq.s32.totalorder %v84_v36, %v1186_v20 }
  0x85   :  { %914 = vmatprep.subr.msk.bf16.mxu0 %vm913_vm2, %v1079_v29  ;;  %vm185_vm1 = vmor %vm117_vm7, %vm159_vm11  ;;  %vm124_vm7 = vcmp.eq.s32.totalorder %v85_v37, %v1184_v19  ;;  %vm166_vm11 = vcmp.eq.s32.totalorder %v85_v37, %v1186_v20 }
  0x86   :  { %vm187_vm13 = vmor %vm119_vm8, %vm161_vm12  ;;  %vm232_vm12 = vcmp.eq.s32.totalorder %v84_v36, %v1188_v21 }
  0x87   :  { %vm253_vm15 = vmor %vm185_vm1, %vm227_vm9  ;;  %vm234_vm9 = vcmp.eq.s32.totalorder %v85_v37, %v1188_v21 }
  0x88   :  { %vm255_vm4 = vmor %vm187_vm13, %vm229_vm10  ;;  %vm300_vm13 = vcmp.eq.s32.totalorder %v84_v36, %v1190_v22 }
  0x89   :  { %vm321_vm5 = vmor %vm253_vm15, %vm295_vm14  ;;  %vm302_vm15 = vcmp.eq.s32.totalorder %v85_v37, %v1190_v22 }
  0x8a   :  { %vm323_vm2 = vmor %vm255_vm4, %vm297_vm3 }
  0x8b   :  { %vm915_vm8 = vmpackc.low %vm323_vm2, %vm321_vm5  ;;  %vm121_vm2 = vcmp.eq.s32.totalorder %v84_v36, %v1201_v25  ;;  %vm163_vm5 = vcmp.eq.s32.totalorder %v84_v36, %v1203_v26 }
  0x8c   :  { %916 = vmatpush1.bf16.msk.msra.mxu0 %vm915_vm8, %v1079_v29  ;;  %vm190_vm1 = vmor %vm122_vm6, %vm164_vm0  ;;  %vm123_vm0 = vcmp.eq.s32.totalorder %v85_v37, %v1201_v25  ;;  %vm165_vm6 = vcmp.eq.s32.totalorder %v85_v37, %v1203_v26 }
  0x8d   :  { %vm192_vm10 = vmor %vm124_vm7, %vm166_vm11  ;;  %vm231_vm11 = vcmp.eq.s32.totalorder %v84_v36, %v1208_v27 }
  0x8e   :  { %vm258_vm14 = vmor %vm190_vm1, %vm232_vm12  ;;  %vm233_vm12 = vcmp.eq.s32.totalorder %v85_v37, %v1208_v27 }
  0x8f   :  { %vm260_vm3 = vmor %vm192_vm10, %vm234_vm9  ;;  %vm299_vm10 = vcmp.eq.s32.totalorder %v84_v36, %v1214_v28 }
  0x90   :  { %vm326_vm4 = vmor %vm258_vm14, %vm300_vm13  ;;  %vm301_vm14 = vcmp.eq.s32.totalorder %v85_v37, %v1214_v28 }
  0x91   :  { %vm328_vm8 = vmor %vm260_vm3, %vm302_vm15 }
  0x92   :  { %vm917_vm7 = vmpackc.low %vm328_vm8, %vm326_vm4  ;;  %vm126_vm4 = vcmp.eq.s32.totalorder %v86_v38, %v1184_v19  ;;  %vm168_vm8 = vcmp.eq.s32.totalorder %v86_v38, %v1186_v20 }
  0x93   :  { %918 = vmatprep.subr.msk.bf16.mxu0 %vm917_vm7, %v1079_v29  ;;  %vm189_vm1 = vmor %vm121_vm2, %vm163_vm5  ;;  %vm128_vm2 = vcmp.eq.s32.totalorder %v87_v39, %v1184_v19  ;;  %vm170_vm5 = vcmp.eq.s32.totalorder %v87_v39, %v1186_v20 }
  0x94   :  { %vm191_vm9 = vmor %vm123_vm0, %vm165_vm6  ;;  %vm236_vm6 = vcmp.eq.s32.totalorder %v86_v38, %v1188_v21 }
  0x95   :  { %vm257_vm13 = vmor %vm189_vm1, %vm231_vm11  ;;  %vm238_vm11 = vcmp.eq.s32.totalorder %v87_v39, %v1188_v21 }
  0x96   :  { %vm259_vm15 = vmor %vm191_vm9, %vm233_vm12  ;;  %vm304_vm12 = vcmp.eq.s32.totalorder %v86_v38, %v1190_v22 }
  0x97   :  { %vm325_vm3 = vmor %vm257_vm13, %vm299_vm10  ;;  %vm306_vm13 = vcmp.eq.s32.totalorder %v87_v39, %v1190_v22 }
  0x98   :  { %vm327_vm7 = vmor %vm259_vm15, %vm301_vm14 }
  0x99   :  { %vm919_vm0 = vmpackc.low %vm327_vm7, %vm325_vm3  ;;  %vm125_vm3 = vcmp.eq.s32.totalorder %v86_v38, %v1201_v25  ;;  %vm167_vm7 = vcmp.eq.s32.totalorder %v86_v38, %v1203_v26 }
  0x9a   :  { %920 = vmatpush1.bf16.msk.msra.mxu0 %vm919_vm0, %v1079_v29  ;;  %vm194_vm1 = vmor %vm126_vm4, %vm168_vm8  ;;  %vm127_vm4 = vcmp.eq.s32.totalorder %v87_v39, %v1201_v25  ;;  %vm169_vm8 = vcmp.eq.s32.totalorder %v87_v39, %v1203_v26 }
  0x9b   :  { %vm196_vm9 = vmor %vm128_vm2, %vm170_vm5  ;;  %vm235_vm5 = vcmp.eq.s32.totalorder %v86_v38, %v1208_v27 }
  0x9c   :  { %vm262_vm10 = vmor %vm194_vm1, %vm236_vm6  ;;  %vm237_vm6 = vcmp.eq.s32.totalorder %v87_v39, %v1208_v27 }
  0x9d   :  { %vm264_vm14 = vmor %vm196_vm9, %vm238_vm11  ;;  %vm303_vm9 = vcmp.eq.s32.totalorder %v86_v38, %v1214_v28 }
  0x9e   :  { %vm330_vm15 = vmor %vm262_vm10, %vm304_vm12  ;;  %vm305_vm10 = vcmp.eq.s32.totalorder %v87_v39, %v1214_v28 }
  0x9f   :  { %vm332_vm0 = vmor %vm264_vm14, %vm306_vm13 }
  0xa0   :  { %vm921_vm2 = vmpackc.low %vm332_vm0, %vm330_vm15  ;;  %vm130_vm0 = vcmp.eq.s32.totalorder %v88_v40, %v1184_v19  ;;  %vm172_vm15 = vcmp.eq.s32.totalorder %v88_v40, %v1186_v20  ;;  %v1081_v19 = vmov 1966171168  }
  0xa1   :  { %922 = vmatprep.subr.msk.bf16.mxu0 %vm921_vm2, %v1079_v29  ;;  %vm193_vm1 = vmor %vm125_vm3, %vm167_vm7  ;;  %vm240_vm3 = vcmp.eq.s32.totalorder %v88_v40, %v1188_v21  ;;  %v800_v20 = vunpack.c.l.s4 %v1081_v19 }
  0xa2   :  { %vm195_vm11 = vmor %vm127_vm4, %vm169_vm8  ;;  %vm308_vm4 = vcmp.eq.s32.totalorder %v88_v40, %v1190_v22 }
  0xa3   :  { %vm261_vm12 = vmor %vm193_vm1, %vm235_vm5  ;;  %vm347_vm1 = vcmp.eq.s32.totalorder %v88_v40, 100  ;;  %v801_v21 = vunpack.c.0.s8 %v800_v20 }
  0xa4   :  { %vm263_vm13 = vmor %vm195_vm11, %vm237_vm6  ;;  %vm129_vm6 = vcmp.eq.s32.totalorder %v88_v40, %v1201_v25  ;;  %vm171_vm11 = vcmp.eq.s32.totalorder %v88_v40, %v1203_v26 }
  0xa5   :  { %vm329_vm14 = vmor %vm261_vm12, %vm303_vm9  ;;  %vm435_vm12 = vcmask 1044480   ;;  %v804_v23 = vsub.s32 %v801_v21, %v1173_v2 }
  0xa6   :  { %vm331_vm2 = vmor %vm263_vm13, %vm305_vm10  ;;  %vm239_vm10 = vcmp.eq.s32.totalorder %v88_v40, %v1208_v27 }
  0xa7   :  { %vm923_vm7 = vmpackc.low %vm331_vm2, %vm329_vm14  ;;  %vm307_vm2 = vcmp.eq.s32.totalorder %v88_v40, %v1214_v28 }
  0xa8   :  { %924 = vmatpush1.bf16.msk.msra.mxu0 %vm923_vm7, %v1079_v29  ;;  %vm198_vm8 = vmor %vm130_vm0, %vm172_vm15 }
  0xa9   :  { %vm266_vm5 = vmor %vm198_vm8, %vm240_vm3  ;;  %vm428_vm3 = vcmask 826368   ;;  %vm1080_vm8 = vmmov 1  }
  0xaa   :  { %vm334_vm9 = vmor %vm266_vm5, %vm308_vm4  ;;  %vm532_vm4 = vcmask 1042432   ;;  %vm525_vm5 = vcmask 89088  }
  0xab   :  { %vm373_vm13 = vmor %vm334_vm9, %vm347_vm1 }
  0xac   :  { %v861_v41 = vsel %vm373_vm13, 1.0, %v1078_v1  ;;  %vm197_vm14 = vmor %vm129_vm6, %vm171_vm11  ;;  %vm816_vm6 = vcmp.lt.s32.totalorder %v75_v0, 256 }
  0xad   :  { %886 = vmatprep.subr.msk.mxu0 %vm435_vm12, %v861_v41  ;;  %vm265_vm7 = vmor %vm197_vm14, %vm239_vm10 }
  0xae   :  { %vm333_vm0 = vmor %vm265_vm7, %vm307_vm2 }
  0xaf   :  { %vm372_vm15 = vmor %vm333_vm0, %vm347_vm1 }
  0xb0   :  { %v860_v43 = vsel %vm372_vm15, 1.0, %v1078_v1  ;;  %vm1338_vm1 = vmpackc.low %vm532_vm4, %vm1080_vm8 }
  0xb1   :  { %887 = vmatpush1.msk.msra.mxu0 %vm435_vm12, %v860_v43 }
  0xb2   :  { %888 = vmatmul.mubr.msk.f32.vlgmr.msra.gmra.mrb[0].mxu0 %vm428_vm3, %v426_v42 }
  0xb3   :  { %512 = vmatprep.mubr.f32.mxu0 %v1078_v1 }
  0xb6   :  { %889 = vmatmul.mubr.msk.f32.gmra.mrb[2].mxu0 %vm428_vm3, %v427_v44 }
 0x185   :  { %v508_v45 = vpop.f32.mrb[0].mxu0 }
 0x186   :  { %v510_v46 = vpop.f32.mrb[1].mxu0  ;;  %v519_v48 = vmax.f32 %v508_v45, 0.0 }
 0x187   :  { %v520_v51 = vmax.f32 %v510_v46, 0.0 }
 0x189   :  { %v514_v47 = vpop.f32.mrb[2].mxu0 }
 0x18a   :  { %v521_v49 = vmax.f32 %v514_v47, 0.0  ;;  %v516_v50 = vpop.f32.mrb[3].mxu0 }
 0x18b   :  { %v522_v52 = vmax.f32 %v516_v50, 0.0 }
 0x18c   :  { %v928_v53 = vpack.c.bf16 %v521_v49, %v519_v48 }
 0x18d   :  { %v925_v55 = vpack.c.bf16 %v522_v52, %v520_v51 }
 0x18f   :  { %927 = vmatprep.subr.msk.bf16.mxu1 %vm1338_vm1, %v925_v55 }
 0x190   :  { %930 = vmatpush1.bf16.msk.msra.mxu1 %vm1338_vm1, %v928_v53 }
 0x193   :  { %892 = vmatmul.mubr.msk.f32.vlgmr.msra.gmra.mrb[0].mxu1 %vm525_vm5, %v523_v56 }
 0x194   :  { %609 = vmatprep.mubr.f32.mxu1 %v1078_v1 }
 0x197   :  { %893 = vmatmul.mubr.msk.f32.gmra.mrb[2].mxu1 %vm525_vm5, %v524_v57 }
 0x198   :  { %698 = vmatprep.mubr.f32.mxu1 %v1078_v1 }
 0x266   :  { %v605_v58 = vpop.f32.mrb[0].mxu1 }
 0x267   :  { %v607_v59 = vpop.f32.mrb[1].mxu1  ;;  %v616_v61 = vmax.f32 %v605_v58, 0.0 }
 0x268   :  { %v617_v3 = vmax.f32 %v607_v59, 0.0 }
 0x26a   :  { %v611_v60 = vpop.f32.mrb[2].mxu1 }
 0x26b   :  { %v618_v62 = vmax.f32 %v611_v60, 0.0  ;;  %v613_v63 = vpop.f32.mrb[3].mxu1 }
 0x26c   :  { %v619_v4 = vmax.f32 %v613_v63, 0.0 }
 0x26d   :  { %v934_v5 = vpack.c.bf16 %v618_v62, %v616_v61 }
 0x26e   :  { %v931_v6 = vpack.c.bf16 %v619_v4, %v617_v3 }
 0x270   :  { %933 = vmatprep.subr.msk.bf16.mxu1 %vm1338_vm1, %v931_v6 }
 0x271   :  { %936 = vmatpush1.bf16.msk.msra.mxu1 %vm1338_vm1, %v934_v5 }
 0x274   :  { %896 = vmatmul.mubr.msk.f32.vlgmr.msra.gmra.mrb[4].mxu1 %vm525_vm5, %v620_v7 }
 0x275   :  { %704 = vmatprep.mubr.f32.mxu1 %v1078_v1 }
 0x278   :  { %897 = vmatmul.mubr.msk.f32.gmra.mrb[6].mxu1 %vm525_vm5, %v621_v8 }
 0x279   :  { %789 = vmatprep.mubr.f32.mxu1 %v1078_v1  ;;  %v715_v1 = vld [vmem:[%s1384_s4] sm:$0x1] }
 0x347   :  { %v700_v9 = vpop.f32.mrb[4].mxu1 }
 0x348   :  { %v702_v10 = vpop.f32.mrb[5].mxu1  ;;  %v711_v12 = vmax.f32 %v700_v9, 0.0 }
 0x349   :  { %v712_v15 = vmax.f32 %v702_v10, 0.0 }
 0x34b   :  { %v706_v11 = vpop.f32.mrb[6].mxu1 }
 0x34c   :  { %v713_v13 = vmax.f32 %v706_v11, 0.0  ;;  %v708_v14 = vpop.f32.mrb[7].mxu1 }
 0x34d   :  { %v714_v16 = vmax.f32 %v708_v14, 0.0 }
 0x34e   :  { %v940_v17 = vpack.c.bf16 %v713_v13, %v711_v12 }
 0x34f   :  { %v937_v18 = vpack.c.bf16 %v714_v16, %v712_v15 }
 0x351   :  { %939 = vmatprep.subr.msk.bf16.mxu1 %vm1338_vm1, %v937_v18 }
 0x352   :  { %942 = vmatpush1.bf16.msk.msra.mxu1 %vm1338_vm1, %v940_v17 }
 0x355   :  { %900 = vmatmul.mubr.msk.f32.vlgmr.msra.gmra.mrb[8].mxu1 %vm525_vm5, %v715_v1 }
 0x428   :  { %v791_v22 = vpop.f32.mrb[8].mxu1 }
 0x429   :  { %v793_v24 = vpop.f32.mrb[9].mxu1 }
 0x42a   :  { %v798_v25 = vcombine.low %v791_v22, %v793_v24 }
 0x42c   :  { %v805_v26 = vrot.slane %v798_v25, %v804_v23 }
 0x42e   :  { %v812_v27 = vrot.slane %v805_v26, %v804_v23 }
 0x430   :  { %818 = vst.msk [vmem:[#allocation10] sm:$0x3] %vm816_vm6, %v812_v27 }
 0x431   :  { %1053 = shalt.err (!%p1050_p8)
}
 0x432   :  { %s1054_s19 = scalar_lea.hbm %s1385_s5, 32 }
 0x433   :  { %p1055_p9 = scmp.ne.s32.totalorder %s1385_s5, %s1054_s19  ;;  %p1058_p10 = scmp.lt.u32.totalorder %s1054_s19, %s1385_s5 }
 0x435   :  { %p1060_p11 = pnand %p1058_p10, %p1055_p9 }
 0x437   :  { %1063 = shalt.err (!%p1060_p11)
}
 0x438   :  { %828 = dma.vmem_to_hbm [thread:$0]  %s826_s17, 32, %s1385_s5, [#allocation4]  }
 0x439   :  { %1070 = dma.done.wait [#allocation4], 32  }
 0x43a   :  { %1071 = vsyncadd [#allocation4], 4294967264 }
 0x43b   :  { %832 = vsyncpa [#allocation3], 1 }
 0x43c   :  { %833 = vsyncpa [#allocation6], 1 }
 0x43d   :  { %834 = vsyncpa [#allocation9], 1 }
 0x43e   :  { %835 = vsyncpa [#allocation4], 1 }

</bundles_post_ra>
